<compile_context>
chip_gen: v7x
topology: tpu7x:2x2x1
jax: 0.10.0
libtpu: 0.0.40
codegen_flags: <defaults>
</compile_context>

<pallas_src>
import numpy as np
import jax
import jax.numpy as jnp
from jax.experimental import pallas as pl
from jax.experimental.pallas import tpu as pltpu

WINDOW_SIZE = 11
SIGMA = 1.5

# SSIM / NFL constants (match the PyTorch reference).
_C1 = 0.01 ** 2
_C2 = 0.03 ** 2
_ALPHA = 0.5          # NFL alpha
_EPS_NFL = 1e-12      # NFL eps
_IGNORE_LABEL = -1.0  # NFL ignore_label

# HBM-streaming / MXU-input dtype.  gt is binary (exact in bf16); logits in
# bf16 are more than adequate for a training loss.  Accumulation is f32.
_STREAM_DTYPE = jnp.bfloat16


class Config:
    """Deterministic in-script stand-in for BiRefNet's Config."""
    def __init__(self):
        self.use_fp16 = False
        self.lambdas_pix_last = {
            'NFL': 30.0,    # NormalizedFocalLossSigmoid
            'iou': 0.5,     # IoULoss
            'ssim': 10.0,   # SSIMLoss (11x11 gaussian window, depthwise conv)
            'iou_patch': 0.0, 'mae': 0.0, 'mse': 0.0,
            'reg': 0.0, 'cnt': 0.0, 'structure': 0.0,
        }


# ----------------------------- parameter setup (glue) -----------------------------

def _gaussian_1d(window_size=WINDOW_SIZE, sigma=SIGMA):
    xs = np.arange(window_size, dtype=np.float32)
    g = np.exp(-((xs - window_size // 2) ** 2) / (2.0 * sigma ** 2)).astype(np.float32)
    return (g / g.sum()).astype(np.float32)


def _band_matrix(n, g, pad):
    """M (n,n) such that M @ x == 1-D 'same' conv of x (zero-padded) with g.
    create_window's 2-D window == outer(g, g), so the depthwise 2-D conv
    F.conv2d(x, window, padding=5) == A_row @ x @ B_col.T exactly."""
    ws = len(g)
    m = np.zeros((n, n), dtype=np.float32)
    for i in range(n):
        for k in range(ws):
            r = i + k - pad
            if 0 <= r < n:
                m[i, r] = g[k]
    return m


def _interp_matrix(n_in, n_out):
    """Static align_corners=True bilinear interpolation matrix (n_out, n_in)."""
    m = np.zeros((n_out, n_in), dtype=np.float32)
    if n_out == 1:
        m[0, 0] = 1.0
        return m
    scale = (n_in - 1) / (n_out - 1)
    for o in range(n_out):
        src = o * scale
        i0 = int(np.floor(src))
        i0 = min(max(i0, 0), n_in - 1)
        i1 = min(i0 + 1, n_in - 1)
        w = src - i0
        m[o, i0] += 1.0 - w
        m[o, i1] += w
    return m


def _interpolate_bilinear_align_corners(x, out_hw):
    """F.interpolate(mode='bilinear', align_corners=True) expressed as two
    static interpolation-matrix matmuls (MXU-friendly; no XLA gathers)."""
    B, C, H, W = x.shape
    out_h, out_w = out_hw
    ry = jnp.asarray(_interp_matrix(H, out_h))        # (out_h, H)
    cxt = jnp.asarray(_interp_matrix(W, out_w).T)     # (W, out_w)
    t = jnp.einsum('oh,bchw->bcow', ry, x)
    return jnp.einsum('bcow,wq->bcoq', t, cxt)


# ----------------------------- the Pallas kernel -----------------------------

def _make_pixloss_kernel(tile_bc, H, W):
    NOP = 5  # number of SSIM conv operands stacked for the fused column pass

    def _per_image_sum(x):  # (tile_bc, H, W) -> (tile_bc, 1, 1)
        s = jnp.sum(x, axis=-1, keepdims=True)
        return jnp.sum(s, axis=-2, keepdims=True)

    def kernel(pred_ref, gt_ref, a_ref, bt_ref, out_ref):
        # bf16 in HBM/VMEM, f32 for all elementwise math & accumulation
        logits = pred_ref[...].astype(jnp.float32)    # (tile_bc, H, W)
        gt = gt_ref[...].astype(jnp.float32)

        # PixLoss applies .sigmoid() to the prediction before every criterion
        p = jax.nn.sigmoid(logits)

        # ---- NormalizedFocalLossSigmoid partials ----
        # (from_sigmoid=False => second sigmoid inside NFL; matches reference)
        p_nfl = jax.nn.sigmoid(p)
        one_hot = gt > 0.5
        sw = (gt != _IGNORE_LABEL).astype(jnp.float32)
        alpha = jnp.where(one_hot, _ALPHA * sw, (1.0 - _ALPHA) * sw)
        pt = jnp.where(sw > 0.0, 1.0 - jnp.abs(gt - p_nfl), jnp.ones_like(p_nfl))
        omp = 1.0 - pt
        beta = omp * omp                               # gamma = 2
        sw_sum = _per_image_sum(sw)                    # (tile_bc, 1, 1)
        beta_sum = _per_image_sum(beta)
        # delimiter (detach is a forward no-op); approx reciprocal -> EUP slot
        mult = sw_sum * pl.reciprocal(beta_sum + _EPS_NFL, approx=True)
        log_pt = jnp.log(jnp.minimum(pt + _EPS_NFL, 1.0))
        nfl_sum = _per_image_sum(-alpha * (beta * mult) * log_pt * sw)

        # ---- IoULoss partials (pred already sigmoided) ----
        iand_sum = _per_image_sum(gt * p)
        p_sum = _per_image_sum(p)
        t_sum = _per_image_sum(gt)

        # ---- SSIMLoss: depthwise 11x11 gaussian conv, padding=5, groups=C ----
        # window == outer(g, g) => conv_same(x) == A @ x @ B^T (separable).
        # Column pass: one fused (5*tile_bc*H, W) @ (W, W) MXU matmul over the
        # five operands of all images; row pass: one batched dot_general.
        p2 = p.reshape(tile_bc * H, W)
        g2 = gt.reshape(tile_bc * H, W)
        x5 = jnp.concatenate([p2, g2, p2 * p2, g2 * g2, p2 * g2], axis=0)
        x5 = x5.astype(_STREAM_DTYPE)                  # bf16 MXU inputs
        ycol = jnp.dot(x5, bt_ref[...], preferred_element_type=jnp.float32)
        ycol = ycol.reshape(NOP * tile_bc, H, W).astype(_STREAM_DTYPE)
        a_b = jnp.broadcast_to(a_ref[...], (NOP * tile_bc, H, H))
        y = jnp.einsum('nij,njw->niw', a_b, ycol,
                       preferred_element_type=jnp.float32)   # (5*tile_bc, H, W) f32

        mu1 = y[0 * tile_bc:1 * tile_bc]
        mu2 = y[1 * tile_bc:2 * tile_bc]
        e11 = y[2 * tile_bc:3 * tile_bc]
        e22 = y[3 * tile_bc:4 * tile_bc]
        e12 = y[4 * tile_bc:5 * tile_bc]
        mu1_sq = mu1 * mu1
        mu2_sq = mu2 * mu2
        mu1_mu2 = mu1 * mu2
        sigma1_sq = e11 - mu1_sq        # cancellation-prone: stays in f32
        sigma2_sq = e22 - mu2_sq
        sigma12 = e12 - mu1_mu2
        numer = (2.0 * mu1_mu2 + _C1) * (2.0 * sigma12 + _C2)
        denom = (mu1_sq + mu2_sq + _C1) * (sigma1_sq + sigma2_sq + _C2)
        ssim_sum = _per_image_sum(numer * pl.reciprocal(denom, approx=True))

        # ---- single consolidated lane-dense store: lanes 0..5 = six partials ----
        lane = jax.lax.broadcasted_iota(jnp.int32, (tile_bc, 1, 128), 2)
        out = (jnp.where(lane == 0, nfl_sum, 0.0)
               + jnp.where(lane == 1, sw_sum, 0.0)
               + jnp.where(lane == 2, iand_sum, 0.0)
               + jnp.where(lane == 3, p_sum, 0.0)
               + jnp.where(lane == 4, t_sum, 0.0)
               + jnp.where(lane == 5, ssim_sum, 0.0))
        out_ref[...] = out

    return kernel


def _choose_tile_bc(BC, H, W):
    """Largest divisor of BC whose in-kernel f32 temporaries fit a ~24 MiB
    budget; then ensure >=2 grid steps when possible so the v7x megacore can
    split the ("parallel",) grid axis across both TensorCores."""
    per_image = H * W * 4 * 48            # generous f32 temp footprint / image
    budget = 24 * 1024 * 1024
    max_tile = max(1, min(BC, budget // max(per_image, 1), 64))
    tile = 1
    for d in range(1, BC + 1):
        if BC % d == 0 and d <= max_tile:
            tile = d
    if BC // tile == 1 and tile % 2 == 0:
        tile //= 2
    return tile


def _per_image_partials(pred_lvl, gt):
    """Runs the Pallas kernel over blocks of TILE_BC images; returns six (B, C)
    arrays: nfl_sum, sample_weight_sum, I_and, sum_pred, sum_target, ssim_sum."""
    B, C, H, W = pred_lvl.shape
    BC = B * C
    tile_bc = _choose_tile_bc(BC, H, W)
    num_blocks = BC // tile_bc

    g = _gaussian_1d()
    pad = WINDOW_SIZE // 2
    a_row = jnp.asarray(_band_matrix(H, g, pad), dtype=_STREAM_DTYPE)      # (H, H)
    b_col_t = jnp.asarray(_band_matrix(W, g, pad).T, dtype=_STREAM_DTYPE)  # (W, W)

    # Explicit scoped-VMEM budget: bf16 inputs (double-buffered) + band-matrix
    # constants + output + f32 in-kernel temporaries, plus headroom; clamped to
    # [32 MiB, 64 MiB] so it is valid on v5e/v6e and on v7x's 64 MiB VMEM.
    in_bytes = 2 * 2 * tile_bc * H * W * 2
    const_bytes = 2 * 2 * (H * H + W * W) * 2
    out_bytes = 2 * tile_bc * 128 * 4
    temp_bytes = tile_bc * H * W * 4 * 48 + 5 * tile_bc * H * H * 2
    vmem_limit = int(in_bytes + const_bytes + out_bytes + temp_bytes) + (8 << 20)
    vmem_limit = max(32 << 20, min(64 << 20, vmem_limit))

    # TODO(synk): for large images (H,W >~ 512) the dense (H,H)/(W,W) band
    # matrices should be single-buffered (pl.Buffered(1)) or replaced by an
    # 11-tap pltpu.roll-based separable conv with H-row halo tiling to respect
    # v7x's 64 MiB VMEM; at the shapes used here they are a few KiB.
    grid_spec = pltpu.PrefetchScalarGridSpec(
        num_scalar_prefetch=0,
        grid=(num_blocks,),
        in_specs=[
            pl.BlockSpec((tile_bc, H, W), lambda i: (i, 0, 0)),  # pred logits (bf16)
            pl.BlockSpec((tile_bc, H, W), lambda i: (i, 0, 0)),  # gt (bf16)
            pl.BlockSpec((H, H), lambda i: (0, 0)),              # row gaussian band matrix
            pl.BlockSpec((W, W), lambda i: (0, 0)),              # col gaussian band matrix^T
        ],
        out_specs=pl.BlockSpec((tile_bc, 1, 128), lambda i: (i, 0, 0)),
    )

    partials = pl.pallas_call(
        _make_pixloss_kernel(tile_bc, H, W),
        out_shape=jax.ShapeDtypeStruct((BC, 1, 128), jnp.float32),
        grid_spec=grid_spec,
        compiler_params=pltpu.CompilerParams(
            dimension_semantics=("parallel",),
            vmem_limit_bytes=vmem_limit),
    )(pred_lvl.reshape(BC, H, W).astype(_STREAM_DTYPE),
      gt.reshape(BC, H, W).astype(_STREAM_DTYPE),
      a_row, b_col_t)

    parts = partials.reshape(B, C, 128)
    return [parts[..., j] for j in range(6)]


def _pix_loss_one_level(pred_lvl, gt, lambdas):
    B, C, H, W = gt.shape
    nfl_s, sw_s, iand, sump, sumt, ssim_s = _per_image_partials(pred_lvl, gt)
    eps = 1e-12
    total = jnp.float32(0.0)

    if lambdas.get('NFL', 0.0):
        # size_average=True: per-sample sum over (C,H,W) / sample-weight count, then mean
        loss_b = jnp.sum(nfl_s, axis=1) / (jnp.sum(sw_s, axis=1) + eps)
        total = total + jnp.mean(loss_b) * lambdas['NFL']

    if lambdas.get('iou', 0.0):
        # IoULoss sums (1 - IoU) over the batch (no mean), matching the reference
        iand_b = jnp.sum(iand, axis=1)
        ior_b = jnp.sum(sumt, axis=1) + jnp.sum(sump, axis=1) - iand_b
        total = total + jnp.sum(1.0 - iand_b / ior_b) * lambdas['iou']

    if lambdas.get('ssim', 0.0):
        # SSIMLoss: 1 - (1 + ssim_map.mean()) / 2, matching the reference
        ssim_mean = jnp.sum(ssim_s) / (B * C * H * W)
        total = total + (1.0 - (1.0 + ssim_mean) / 2.0) * lambdas['ssim']

    return total


class PixLoss:
    """JAX/Pallas port of PixLoss.forward (NFL + IoU + SSIM enabled by Config)."""
    def __init__(self):
        self.config = Config()
        self.lambdas_pix_last = self.config.lambdas_pix_last
        # TODO(synk): NFL's stateful _k_sum/_m_max host-side (numpy) bookkeeping is
        # omitted — it does not affect the returned loss value.

    def __call__(self, scaled_preds, gt):
        loss = jnp.float32(0.0)
        for pred_lvl in scaled_preds:
            if pred_lvl.shape != gt.shape:
                pred_lvl = _interpolate_bilinear_align_corners(pred_lvl, gt.shape[2:])
            loss = loss + _pix_loss_one_level(pred_lvl, gt, self.lambdas_pix_last)
        return loss


if __name__ == "__main__":
    key = jax.random.PRNGKey(0)
    k1, k2, k3 = jax.random.split(key, 3)
    B, C, H, W = 2, 1, 16, 16
    gt = (jax.random.uniform(k1, (B, C, H, W)) > 0.5).astype(jnp.float32)
    scaled_preds = [
        jax.random.normal(k2, (B, C, H, W), jnp.float32),            # full-res level
        jax.random.normal(k3, (B, C, H // 2, W // 2), jnp.float32),  # half-res level (interpolated)
    ]
    loss_fn = PixLoss()
    loss = loss_fn(scaled_preds, gt)
    jax.block_until_ready(loss)
    print("KERNEL_OK")
</pallas_src>

<mosaic_0001>
module attributes {stable_mosaic.version = 11 : i64} {
  func.func @kernel(%arg0: i32, %arg1: memref<1x16x16xbf16, #tpu.memory_space<vmem>>, %arg2: memref<1x16x16xbf16, #tpu.memory_space<vmem>>, %arg3: memref<16x16xbf16, #tpu.memory_space<vmem>>, %arg4: memref<16x16xbf16, #tpu.memory_space<vmem>>, %arg5: memref<1x1x128xf32, #tpu.memory_space<vmem>>) attributes {dimension_semantics = [#tpu.dimension_semantics<parallel>], iteration_bounds = array<i64: 2>, scalar_prefetch = 0 : i64, scratch_operands = 0 : i64, tpu.core_type = #tpu.core_type<tc>, window_params = [{transform_indices = @transform_0, window_bounds = array<i64: 1, 16, 16>}, {transform_indices = @transform_1, window_bounds = array<i64: 1, 16, 16>}, {pipeline_mode = #tpu.pipeline_mode<synchronous>, transform_indices = @transform_2, window_bounds = array<i64: 16, 16>}, {pipeline_mode = #tpu.pipeline_mode<synchronous>, transform_indices = @transform_3, window_bounds = array<i64: 16, 16>}, {transform_indices = @transform_4, window_bounds = array<i64: 1, 1, 128>}]} {
    %c0 = arith.constant 0 : index
    %c0_0 = arith.constant 0 : index
    %c0_1 = arith.constant 0 : index
    %0 = vector.load %arg1[%c0, %c0_0, %c0_1] : memref<1x16x16xbf16, #tpu.memory_space<vmem>>, vector<1x16x16xbf16>
    %1 = arith.extf %0 : vector<1x16x16xbf16> to vector<1x16x16xf32>
    %c0_2 = arith.constant 0 : index
    %c0_3 = arith.constant 0 : index
    %c0_4 = arith.constant 0 : index
    %2 = vector.load %arg2[%c0_2, %c0_3, %c0_4] : memref<1x16x16xbf16, #tpu.memory_space<vmem>>, vector<1x16x16xbf16>
    %3 = arith.extf %2 : vector<1x16x16xbf16> to vector<1x16x16xf32>
    %4 = arith.negf %1 : vector<1x16x16xf32>
    %5 = math.exp %4 : vector<1x16x16xf32>
    %cst = arith.constant 1.000000e+00 : f32
    %6 = vector.broadcast %cst : f32 to vector<1x16x16xf32>
    %7 = arith.addf %6, %5 : vector<1x16x16xf32>
    %8 = arith.divf %6, %7 : vector<1x16x16xf32>
    %9 = arith.negf %8 : vector<1x16x16xf32>
    %10 = math.exp %9 : vector<1x16x16xf32>
    %cst_5 = arith.constant 1.000000e+00 : f32
    %11 = vector.broadcast %cst_5 : f32 to vector<1x16x16xf32>
    %12 = arith.addf %11, %10 : vector<1x16x16xf32>
    %13 = arith.divf %11, %12 : vector<1x16x16xf32>
    %cst_6 = arith.constant 5.000000e-01 : f32
    %14 = vector.broadcast %cst_6 : f32 to vector<1x16x16xf32>
    %15 = arith.cmpf ogt, %3, %14 : vector<1x16x16xf32>
    %cst_7 = arith.constant -1.000000e+00 : f32
    %16 = vector.broadcast %cst_7 : f32 to vector<1x16x16xf32>
    %17 = arith.cmpf one, %3, %16 : vector<1x16x16xf32>
    %18 = arith.extui %17 : vector<1x16x16xi1> to vector<1x16x16xi32>
    %19 = arith.sitofp %18 : vector<1x16x16xi32> to vector<1x16x16xf32>
    %cst_8 = arith.constant 5.000000e-01 : f32
    %20 = vector.broadcast %cst_8 : f32 to vector<1x16x16xf32>
    %21 = arith.mulf %20, %19 : vector<1x16x16xf32>
    %cst_9 = arith.constant 5.000000e-01 : f32
    %22 = vector.broadcast %cst_9 : f32 to vector<1x16x16xf32>
    %23 = arith.mulf %22, %19 : vector<1x16x16xf32>
    %24 = arith.select %15, %21, %23 : vector<1x16x16xi1>, vector<1x16x16xf32>
    %cst_10 = arith.constant 0.000000e+00 : f32
    %25 = vector.broadcast %cst_10 : f32 to vector<1x16x16xf32>
    %26 = arith.cmpf ogt, %19, %25 : vector<1x16x16xf32>
    %27 = arith.subf %3, %13 : vector<1x16x16xf32>
    %28 = math.absf %27 : vector<1x16x16xf32>
    %cst_11 = arith.constant 1.000000e+00 : f32
    %29 = vector.broadcast %cst_11 : f32 to vector<1x16x16xf32>
    %30 = arith.subf %29, %28 : vector<1x16x16xf32>
    %cst_12 = arith.constant 1.000000e+00 : f32
    %31 = vector.broadcast %cst_12 : f32 to vector<1x16x16xf32>
    %32 = arith.select %26, %30, %31 : vector<1x16x16xi1>, vector<1x16x16xf32>
    %cst_13 = arith.constant 1.000000e+00 : f32
    %33 = vector.broadcast %cst_13 : f32 to vector<1x16x16xf32>
    %34 = arith.subf %33, %32 : vector<1x16x16xf32>
    %35 = arith.mulf %34, %34 : vector<1x16x16xf32>
    %cst_14 = arith.constant dense<0.000000e+00> : vector<1x16xf32>
    %36 = vector.multi_reduction <add>, %19, %cst_14 [2] : vector<1x16x16xf32> to vector<1x16xf32>
    %37 = vector.shape_cast %36 : vector<1x16xf32> to vector<1x16x1xf32>
    %cst_15 = arith.constant dense<0.000000e+00> : vector<1x1xf32>
    %38 = vector.multi_reduction <add>, %37, %cst_15 [1] : vector<1x16x1xf32> to vector<1x1xf32>
    %39 = vector.shape_cast %38 : vector<1x1xf32> to vector<1x1x1xf32>
    %cst_16 = arith.constant dense<0.000000e+00> : vector<1x16xf32>
    %40 = vector.multi_reduction <add>, %35, %cst_16 [2] : vector<1x16x16xf32> to vector<1x16xf32>
    %41 = vector.shape_cast %40 : vector<1x16xf32> to vector<1x16x1xf32>
    %cst_17 = arith.constant dense<0.000000e+00> : vector<1x1xf32>
    %42 = vector.multi_reduction <add>, %41, %cst_17 [1] : vector<1x16x1xf32> to vector<1x1xf32>
    %43 = vector.shape_cast %42 : vector<1x1xf32> to vector<1x1x1xf32>
    %cst_18 = arith.constant 9.99999996E-13 : f32
    %44 = vector.broadcast %cst_18 : f32 to vector<1x1x1xf32>
    %45 = arith.addf %43, %44 : vector<1x1x1xf32>
    %46 = tpu.reciprocal %45 {approx = true} : vector<1x1x1xf32> -> vector<1x1x1xf32>
    %47 = arith.mulf %39, %46 : vector<1x1x1xf32>
    %cst_19 = arith.constant 9.99999996E-13 : f32
    %48 = vector.broadcast %cst_19 : f32 to vector<1x16x16xf32>
    %49 = arith.addf %32, %48 : vector<1x16x16xf32>
    %cst_20 = arith.constant 1.000000e+00 : f32
    %50 = vector.broadcast %cst_20 : f32 to vector<1x16x16xf32>
    %51 = arith.minimumf %49, %50 : vector<1x16x16xf32>
    %52 = math.log %51 : vector<1x16x16xf32>
    %cst_21 = arith.constant 0.000000e+00 : f32
    %53 = vector.broadcast %cst_21 : f32 to vector<1x16x16xf32>
    %54 = arith.subf %53, %24 : vector<1x16x16xf32>
    %55 = vector.broadcast %47 : vector<1x1x1xf32> to vector<1x16x16xf32>
    %56 = arith.mulf %35, %55 : vector<1x16x16xf32>
    %57 = arith.mulf %54, %56 : vector<1x16x16xf32>
    %58 = arith.mulf %57, %52 : vector<1x16x16xf32>
    %59 = arith.mulf %58, %19 : vector<1x16x16xf32>
    %cst_22 = arith.constant dense<0.000000e+00> : vector<1x16xf32>
    %60 = vector.multi_reduction <add>, %59, %cst_22 [2] : vector<1x16x16xf32> to vector<1x16xf32>
    %61 = vector.shape_cast %60 : vector<1x16xf32> to vector<1x16x1xf32>
    %cst_23 = arith.constant dense<0.000000e+00> : vector<1x1xf32>
    %62 = vector.multi_reduction <add>, %61, %cst_23 [1] : vector<1x16x1xf32> to vector<1x1xf32>
    %63 = vector.shape_cast %62 : vector<1x1xf32> to vector<1x1x1xf32>
    %64 = arith.mulf %3, %8 : vector<1x16x16xf32>
    %cst_24 = arith.constant dense<0.000000e+00> : vector<1x16xf32>
    %65 = vector.multi_reduction <add>, %64, %cst_24 [2] : vector<1x16x16xf32> to vector<1x16xf32>
    %66 = vector.shape_cast %65 : vector<1x16xf32> to vector<1x16x1xf32>
    %cst_25 = arith.constant dense<0.000000e+00> : vector<1x1xf32>
    %67 = vector.multi_reduction <add>, %66, %cst_25 [1] : vector<1x16x1xf32> to vector<1x1xf32>
    %68 = vector.shape_cast %67 : vector<1x1xf32> to vector<1x1x1xf32>
    %cst_26 = arith.constant dense<0.000000e+00> : vector<1x16xf32>
    %69 = vector.multi_reduction <add>, %8, %cst_26 [2] : vector<1x16x16xf32> to vector<1x16xf32>
    %70 = vector.shape_cast %69 : vector<1x16xf32> to vector<1x16x1xf32>
    %cst_27 = arith.constant dense<0.000000e+00> : vector<1x1xf32>
    %71 = vector.multi_reduction <add>, %70, %cst_27 [1] : vector<1x16x1xf32> to vector<1x1xf32>
    %72 = vector.shape_cast %71 : vector<1x1xf32> to vector<1x1x1xf32>
    %cst_28 = arith.constant dense<0.000000e+00> : vector<1x16xf32>
    %73 = vector.multi_reduction <add>, %3, %cst_28 [2] : vector<1x16x16xf32> to vector<1x16xf32>
    %74 = vector.shape_cast %73 : vector<1x16xf32> to vector<1x16x1xf32>
    %cst_29 = arith.constant dense<0.000000e+00> : vector<1x1xf32>
    %75 = vector.multi_reduction <add>, %74, %cst_29 [1] : vector<1x16x1xf32> to vector<1x1xf32>
    %76 = vector.shape_cast %75 : vector<1x1xf32> to vector<1x1x1xf32>
    %77 = vector.shape_cast %8 : vector<1x16x16xf32> to vector<16x16xf32>
    %78 = vector.shape_cast %3 : vector<1x16x16xf32> to vector<16x16xf32>
    %79 = arith.mulf %77, %77 : vector<16x16xf32>
    %80 = arith.mulf %78, %78 : vector<16x16xf32>
    %81 = arith.mulf %77, %78 : vector<16x16xf32>
    %82 = tpu.concatenate %77, %78, %79, %80, %81 in 0 : vector<16x16xf32>, vector<16x16xf32>, vector<16x16xf32>, vector<16x16xf32>, vector<16x16xf32> -> vector<80x16xf32>
    %83 = arith.truncf %82 : vector<80x16xf32> to vector<80x16xbf16>
    %c0_30 = arith.constant 0 : index
    %c0_31 = arith.constant 0 : index
    %84 = vector.load %arg4[%c0_30, %c0_31] : memref<16x16xbf16, #tpu.memory_space<vmem>>, vector<16x16xbf16>
    %cst_32 = arith.constant dense<0.000000e+00> : vector<80x16xf32>
    %85 = tpu.matmul %83, %84, %cst_32 {dimension_numbers = #tpu.dot_dimension_numbers<[1], [0], [0], [1], [0, 0, 1, 1], [], []>} : vector<80x16xbf16>, vector<16x16xbf16>, vector<80x16xf32> -> vector<80x16xf32>
    %86 = vector.shape_cast %85 : vector<80x16xf32> to vector<5x16x16xf32>
    %87 = arith.truncf %86 : vector<5x16x16xf32> to vector<5x16x16xbf16>
    %c0_33 = arith.constant 0 : index
    %c0_34 = arith.constant 0 : index
    %88 = vector.load %arg3[%c0_33, %c0_34] : memref<16x16xbf16, #tpu.memory_space<vmem>>, vector<16x16xbf16>
    %89 = vector.shape_cast %88 : vector<16x16xbf16> to vector<1x16x16xbf16>
    %90 = vector.broadcast %89 : vector<1x16x16xbf16> to vector<5x16x16xbf16>
    "tpu.trace_start"() <{level = 10 : i32, message = "nij,njw->niw"}> : () -> ()
    %cst_35 = arith.constant dense<0.000000e+00> : vector<5x16x16xf32>
    %91 = tpu.matmul %90, %87, %cst_35 {dimension_numbers = #tpu.dot_dimension_numbers<[2], [1], [1], [2], [0, 0, 0, 1, 1, 2], [0], [0]>} : vector<5x16x16xbf16>, vector<5x16x16xbf16>, vector<5x16x16xf32> -> vector<5x16x16xf32>
    "tpu.trace_stop"() : () -> ()
    %92 = vector.extract_strided_slice %91 {offsets = [0, 0, 0], sizes = [1, 16, 16], strides = [1, 1, 1]} : vector<5x16x16xf32> to vector<1x16x16xf32>
    %93 = vector.extract_strided_slice %91 {offsets = [1, 0, 0], sizes = [1, 16, 16], strides = [1, 1, 1]} : vector<5x16x16xf32> to vector<1x16x16xf32>
    %94 = vector.extract_strided_slice %91 {offsets = [2, 0, 0], sizes = [1, 16, 16], strides = [1, 1, 1]} : vector<5x16x16xf32> to vector<1x16x16xf32>
    %95 = vector.extract_strided_slice %91 {offsets = [3, 0, 0], sizes = [1, 16, 16], strides = [1, 1, 1]} : vector<5x16x16xf32> to vector<1x16x16xf32>
    %96 = vector.extract_strided_slice %91 {offsets = [4, 0, 0], sizes = [1, 16, 16], strides = [1, 1, 1]} : vector<5x16x16xf32> to vector<1x16x16xf32>
    %97 = arith.mulf %92, %92 : vector<1x16x16xf32>
    %98 = arith.mulf %93, %93 : vector<1x16x16xf32>
    %99 = arith.mulf %92, %93 : vector<1x16x16xf32>
    %100 = arith.subf %94, %97 : vector<1x16x16xf32>
    %101 = arith.subf %95, %98 : vector<1x16x16xf32>
    %102 = arith.subf %96, %99 : vector<1x16x16xf32>
    %cst_36 = arith.constant 2.000000e+00 : f32
    %103 = vector.broadcast %cst_36 : f32 to vector<1x16x16xf32>
    %104 = arith.mulf %103, %99 : vector<1x16x16xf32>
    %cst_37 = arith.constant 9.99999974E-5 : f32
    %105 = vector.broadcast %cst_37 : f32 to vector<1x16x16xf32>
    %106 = arith.addf %104, %105 : vector<1x16x16xf32>
    %cst_38 = arith.constant 2.000000e+00 : f32
    %107 = vector.broadcast %cst_38 : f32 to vector<1x16x16xf32>
    %108 = arith.mulf %107, %102 : vector<1x16x16xf32>
    %cst_39 = arith.constant 8.99999984E-4 : f32
    %109 = vector.broadcast %cst_39 : f32 to vector<1x16x16xf32>
    %110 = arith.addf %108, %109 : vector<1x16x16xf32>
    %111 = arith.mulf %106, %110 : vector<1x16x16xf32>
    %112 = arith.addf %97, %98 : vector<1x16x16xf32>
    %cst_40 = arith.constant 9.99999974E-5 : f32
    %113 = vector.broadcast %cst_40 : f32 to vector<1x16x16xf32>
    %114 = arith.addf %112, %113 : vector<1x16x16xf32>
    %115 = arith.addf %100, %101 : vector<1x16x16xf32>
    %cst_41 = arith.constant 8.99999984E-4 : f32
    %116 = vector.broadcast %cst_41 : f32 to vector<1x16x16xf32>
    %117 = arith.addf %115, %116 : vector<1x16x16xf32>
    %118 = arith.mulf %114, %117 : vector<1x16x16xf32>
    %119 = tpu.reciprocal %118 {approx = true} : vector<1x16x16xf32> -> vector<1x16x16xf32>
    %120 = arith.mulf %111, %119 : vector<1x16x16xf32>
    %cst_42 = arith.constant dense<0.000000e+00> : vector<1x16xf32>
    %121 = vector.multi_reduction <add>, %120, %cst_42 [2] : vector<1x16x16xf32> to vector<1x16xf32>
    %122 = vector.shape_cast %121 : vector<1x16xf32> to vector<1x16x1xf32>
    %cst_43 = arith.constant dense<0.000000e+00> : vector<1x1xf32>
    %123 = vector.multi_reduction <add>, %122, %cst_43 [1] : vector<1x16x1xf32> to vector<1x1xf32>
    %124 = vector.shape_cast %123 : vector<1x1xf32> to vector<1x1x1xf32>
    %125 = tpu.iota {dimensions = array<i32: 2>} : vector<1x1x128xi32>
    %c0_i32 = arith.constant 0 : i32
    %126 = vector.broadcast %c0_i32 : i32 to vector<1x1x128xi32>
    %127 = arith.cmpi eq, %125, %126 : vector<1x1x128xi32>
    %cst_44 = arith.constant 0.000000e+00 : f32
    %128 = vector.shape_cast %63 : vector<1x1x1xf32> to vector<1x1x1xf32>
    %129 = vector.broadcast %128 : vector<1x1x1xf32> to vector<1x1x128xf32>
    %130 = vector.broadcast %cst_44 : f32 to vector<1x1x128xf32>
    %131 = arith.select %127, %129, %130 : vector<1x1x128xi1>, vector<1x1x128xf32>
    %c1_i32 = arith.constant 1 : i32
    %132 = vector.broadcast %c1_i32 : i32 to vector<1x1x128xi32>
    %133 = arith.cmpi eq, %125, %132 : vector<1x1x128xi32>
    %cst_45 = arith.constant 0.000000e+00 : f32
    %134 = vector.shape_cast %39 : vector<1x1x1xf32> to vector<1x1x1xf32>
    %135 = vector.broadcast %134 : vector<1x1x1xf32> to vector<1x1x128xf32>
    %136 = vector.broadcast %cst_45 : f32 to vector<1x1x128xf32>
    %137 = arith.select %133, %135, %136 : vector<1x1x128xi1>, vector<1x1x128xf32>
    %138 = arith.addf %131, %137 : vector<1x1x128xf32>
    %c2_i32 = arith.constant 2 : i32
    %139 = vector.broadcast %c2_i32 : i32 to vector<1x1x128xi32>
    %140 = arith.cmpi eq, %125, %139 : vector<1x1x128xi32>
    %cst_46 = arith.constant 0.000000e+00 : f32
    %141 = vector.shape_cast %68 : vector<1x1x1xf32> to vector<1x1x1xf32>
    %142 = vector.broadcast %141 : vector<1x1x1xf32> to vector<1x1x128xf32>
    %143 = vector.broadcast %cst_46 : f32 to vector<1x1x128xf32>
    %144 = arith.select %140, %142, %143 : vector<1x1x128xi1>, vector<1x1x128xf32>
    %145 = arith.addf %138, %144 : vector<1x1x128xf32>
    %c3_i32 = arith.constant 3 : i32
    %146 = vector.broadcast %c3_i32 : i32 to vector<1x1x128xi32>
    %147 = arith.cmpi eq, %125, %146 : vector<1x1x128xi32>
    %cst_47 = arith.constant 0.000000e+00 : f32
    %148 = vector.shape_cast %72 : vector<1x1x1xf32> to vector<1x1x1xf32>
    %149 = vector.broadcast %148 : vector<1x1x1xf32> to vector<1x1x128xf32>
    %150 = vector.broadcast %cst_47 : f32 to vector<1x1x128xf32>
    %151 = arith.select %147, %149, %150 : vector<1x1x128xi1>, vector<1x1x128xf32>
    %152 = arith.addf %145, %151 : vector<1x1x128xf32>
    %c4_i32 = arith.constant 4 : i32
    %153 = vector.broadcast %c4_i32 : i32 to vector<1x1x128xi32>
    %154 = arith.cmpi eq, %125, %153 : vector<1x1x128xi32>
    %cst_48 = arith.constant 0.000000e+00 : f32
    %155 = vector.shape_cast %76 : vector<1x1x1xf32> to vector<1x1x1xf32>
    %156 = vector.broadcast %155 : vector<1x1x1xf32> to vector<1x1x128xf32>
    %157 = vector.broadcast %cst_48 : f32 to vector<1x1x128xf32>
    %158 = arith.select %154, %156, %157 : vector<1x1x128xi1>, vector<1x1x128xf32>
    %159 = arith.addf %152, %158 : vector<1x1x128xf32>
    %c5_i32 = arith.constant 5 : i32
    %160 = vector.broadcast %c5_i32 : i32 to vector<1x1x128xi32>
    %161 = arith.cmpi eq, %125, %160 : vector<1x1x128xi32>
    %cst_49 = arith.constant 0.000000e+00 : f32
    %162 = vector.shape_cast %124 : vector<1x1x1xf32> to vector<1x1x1xf32>
    %163 = vector.broadcast %162 : vector<1x1x1xf32> to vector<1x1x128xf32>
    %164 = vector.broadcast %cst_49 : f32 to vector<1x1x128xf32>
    %165 = arith.select %161, %163, %164 : vector<1x1x128xi1>, vector<1x1x128xf32>
    %166 = arith.addf %159, %165 : vector<1x1x128xf32>
    %c0_50 = arith.constant 0 : index
    %c0_51 = arith.constant 0 : index
    %c0_52 = arith.constant 0 : index
    %167 = vector.load %arg5[%c0_50, %c0_51, %c0_52] : memref<1x1x128xf32, #tpu.memory_space<vmem>>, vector<1x1x128xf32>
    tpu.vector_store %arg5[%c0_50, %c0_51, %c0_52], %166 {strides = array<i32>} : memref<1x1x128xf32, #tpu.memory_space<vmem>>, vector<1x1x128xf32>,
    return
  }
  func.func @transform_0(%arg0: i32) -> (i32, i32, i32) {
    %c0_i32 = arith.constant 0 : i32
    %c0_i32_0 = arith.constant 0 : i32
    %c0_i32_1 = arith.constant 0 : i32
    return %arg0, %c0_i32, %c0_i32_0 : i32, i32, i32
  }
  func.func @transform_1(%arg0: i32) -> (i32, i32, i32) {
    %c0_i32 = arith.constant 0 : i32
    %c0_i32_0 = arith.constant 0 : i32
    %c0_i32_1 = arith.constant 0 : i32
    return %arg0, %c0_i32, %c0_i32_0 : i32, i32, i32
  }
  func.func @transform_2(%arg0: i32) -> (i32, i32) {
    %c0_i32 = arith.constant 0 : i32
    %c0_i32_0 = arith.constant 0 : i32
    %c0_i32_1 = arith.constant 0 : i32
    return %c0_i32, %c0_i32_0 : i32, i32
  }
  func.func @transform_3(%arg0: i32) -> (i32, i32) {
    %c0_i32 = arith.constant 0 : i32
    %c0_i32_0 = arith.constant 0 : i32
    %c0_i32_1 = arith.constant 0 : i32
    return %c0_i32, %c0_i32_0 : i32, i32
  }
  func.func @transform_4(%arg0: i32) -> (i32, i32, i32) {
    %c0_i32 = arith.constant 0 : i32
    %c0_i32_0 = arith.constant 0 : i32
    %c0_i32_1 = arith.constant 0 : i32
    return %arg0, %c0_i32, %c0_i32_0 : i32, i32, i32
  }
}

</mosaic_0001>

<bundles_post_ra>
// kernel: tpu_custom_call.1
= control target key start
LH: loop header
LB: loop body
LE: loop exit
PB: predicated region body
PF: predicated region fallthrough
CT: control target
= control target key end

     0   :  { %s1673_s0 = inlined_call_operand.hbm [shape: bf16[2,16,16], index: 0, kind: input, shape index: {}]   ;;  %s1674_s1 = inlined_call_operand.hbm [shape: bf16[2,16,16], index: 1, kind: input, shape index: {}]   ;;  %s1675_s2 = inlined_call_operand.hbm [shape: bf16[16,16], index: 2, kind: input, shape index: {}]   ;;  %s1676_s3 = inlined_call_operand.vmem [shape: bf16[16,16], index: 3, kind: input, shape index: {}]   ;;  %s1677_s4 = inlined_call_operand.hbm [shape: f32[2,1,128], index: 4, kind: output, shape index: {}]  }
   0x1   :  { %1685 = sst [smem:[#allocation14_spill]] %s1673_s0 }
   0x2   :  { %1686 = sst [smem:[#allocation15_spill]] %s1675_s2 }
   0x3   :  { %9 = vsyncpa [#allocation3], 0 }
   0x4   :  { %11 = vsyncpa [#allocation3 + $0x1], 0 }
   0x5   :  { %12 = vsyncpa [#allocation6], 0 }
   0x6   :  { %14 = vsyncpa [#allocation6 + $0x1], 0 }
   0x7   :  { %15 = vsyncpa [#allocation4], 0 }
   0x8   :  { %17 = vsyncpa [#allocation4 + $0x1], 0  ;;  %s1334_s15 = smov 0   ;;  %s1336_s16 = smov 0  }
   0x9   :  { %s1338_s17 = smov 0   ;;  %s1340_s18 = smov 0  }
   0xa LB: > { %s1355_s19 = sadd.s32 4294967295, %s1299_s18   ;;  %s931_s20 = sadd.s32 4294967294, %s1299_s18   ;;  %s1299_s18 = sphi %s1340_s18, %s1709_s18   ;;  %s1295_s17 = sphi %s1338_s17, %s1708_s17   ;;  %s1291_s16 = sphi %s1336_s16, %s1707_s16   ;;  %s1287_s15 = sphi %s1334_s15, %s1706_s15  }
   0xb   : > { %p43_p0 = scmp.ne.s32.totalorder %s1291_s16, %s1287_s15  ;;  %p1678_p1 = scmp.eq.s32.totalorder %s1355_s19, 0 }
   0xc   : > { %p141_p3 = scmp.eq.s32.totalorder %s931_s20, 1  ;;  %p932_p5 = scmp.ge.s32.totalorder %s1299_s18, 1 }
   0xd   : > { %p1364_p4 = por %p1678_p1, %p43_p0  ;;  %p148_p7 = scmp.lt.s32.totalorder %s1299_s18, 3 }
   0xe   : > { %p1369_p6 = por %p141_p3, %p43_p0  ;;  %s1301_s24 = smov [#allocation7]  }
   0xf   : > { %s1687_s21 = scalar_select %p1364_p4, 1, 0 }
  0x10   : > { %s1688_s22 = scalar_select %p1369_p6, 1, 0 }
  0x11   : > { %p1374_p8 = pnand %p932_p5, %p148_p7  ;;  %s160_s25 = sshll.u32 %s1301_s24, 4  ;;  %s1378_s25 = int_to_ptr.vmem [resolvable:$true] %s160_s25 }
  0x12   : > { %s1390_s27 = sadd.s32 1, %s1299_s18   ;;  %s30_s28 = sadd.s32 1, %s1295_s17 }
  0x13   : > { %s1689_s23 = scalar_select %p1374_p8, 1, 0 }
  0x14   : > { %p1051_p9 = pneg %p1374_p8  ;;  %s27_s29 = ssub.s32 %s1299_s18, %s1390_s27 }
  0x15   : > { %s1691_s2 = sld [smem:[#allocation15_spill]] }
  0x16   : > { %p1385_p11 = pnand %p1051_p9, %p1678_p1 }
  0x18   : > { %p1139_p13 = pneg %p1385_p11 }
  0x1b   : > { %s1137_s6 = scalar_lea.hbm %s1691_s2, 128 }
  0x1c   : > { %p1138_p12 = scmp.ne.s32.totalorder %s1691_s2, %s1137_s6  ;;  %p1144_p5 = scmp.lt.u32.totalorder %s1137_s6, %s1691_s2 }
  0x1e   : > { %p1140_p0 = pnand %p1139_p13, %p1138_p12 }
  0x20   : > { %p1141_p3 = pneg %p1140_p0 }
  0x22   : > { %p1146_p7 = pnand %p1144_p5, %p1141_p3 }
  0x24   : > { %1149 = shalt.err (!%p1146_p7)
}
  0x25   : > { %s1150_s11 = scalar_lea.vmem %s1378_s25, 128  ;;  %p1158_p2 = scmp.lt.s32.totalorder %s1378_s25, %s1378_s25 }
  0x26   : > { %p1151_p9 = scmp.ne.s32.totalorder %s1378_s25, %s1150_s11  ;;  %p1159_p6 = scmp.lt.s32.totalorder %s1150_s11, %s1150_s11 }
  0x28   : > { %p1153_p10 = pnand %p1151_p9, %p1139_p13  ;;  %p1160_p4 = por %p1159_p6, %p1158_p2 }
  0x2a   : > { %p1154_p1 = pneg %p1153_p10 }
  0x2c   : > { %p1161_p8 = pnand %p1160_p4, %p1154_p1 }
  0x2e   : > { %1164 = shalt.err (!%p1161_p8)
}
  0x2f   : > { %s1681_s12 = smov 64   ;;  %s1683_s13 = smov 4  }
  0x30   : > { %1054 = dma.hbm_to_vmem [thread:$0]  (!%p1385_p11), %s1691_s2, 128, %s1378_s25, [#allocation6], %s1681_s12, %s1681_s12, %s1683_s13  }
  0x31   : > { %p28_p1 = scmp.eq.s32.totalorder %s27_s29, 0  ;;  %p37_p2 = scmp.ne.s32.totalorder %s1295_s17, %s1291_s16 }
  0x32   : > { %p38_p4 = scmp.eq.s32.totalorder %s1299_s18, 0  ;;  %p1067_p6 = scmp.lt.s32.totalorder %s1299_s18, 2 }
  0x33   : > { %s1424_s24 = scalar_select %p28_p1, %s1295_s17, %s30_s28  }
  0x34   : > { %p39_p8 = por %p38_p4, %p37_p2  ;;  %p1693_p10 = scmp.eq.s32.totalorder %s1355_s19, 1 }
  0x35   : > { %1692 = sst [smem:[#allocation13_spill]] %s1424_s24  ;;  %s177_s26 = sand.u32 1, %s1295_s17  }
  0x36   : > { %p1428_p12 = por %p1693_p10, %p37_p2  ;;  %s967_s5 = sshll.u32 %s1299_s18, 7 }
  0x37   : > { %s1434_s6 = sshll.u32 %s177_s26, 3  ;;  %s1695_s0 = sld [smem:[#allocation14_spill]] }
  0x38   : > { %s181_s28 = scalar_lea.vmem [#allocation2], %s1434_s6  ;;  %p1442_p11 = pnand %p1067_p6, %p39_p8 }
  0x39   : > { %s188_s29 = sshll.u32 %s181_s28, 4  ;;  %s1451_s14 = scalar_lea.hbm %s1674_s1, %s967_s5  ;;  %s1446_s29 = int_to_ptr.vmem [resolvable:$true] %s188_s29 }
  0x3a   : > { %s1453_s20 = scalar_lea.sflag [#allocation3], %s177_s26  ;;  %p1167_p0 = pneg %p1442_p11 }
  0x3d   : > { %s1439_s25 = scalar_lea.hbm %s1695_s0, %s967_s5  ;;  %s1170_s12 = scalar_lea.hbm %s1695_s0, 256 }
  0x3e   : > { %s1165_s7 = scalar_lea.hbm %s1439_s25, 128  ;;  %p1171_p7 = scmp.lt.u32.totalorder %s1439_s25, %s1695_s0 }
  0x3f   : > { %p1166_p13 = scmp.ne.s32.totalorder %s1439_s25, %s1165_s7  ;;  %p1172_p9 = scmp.lt.u32.totalorder %s1170_s12, %s1165_s7 }
  0x40   : > { %p1174_p2 = scmp.lt.u32.totalorder %s1165_s7, %s1439_s25 }
  0x41   : > { %p1168_p3 = pnand %p1167_p0, %p1166_p13  ;;  %p1173_p1 = por %p1172_p9, %p1171_p7 }
  0x43   : > { %p1169_p5 = pneg %p1168_p3  ;;  %p1175_p4 = por %p1174_p2, %p1173_p1 }
  0x45   : > { %p1176_p6 = pnand %p1175_p4, %p1169_p5 }
  0x47   : > { %1179 = shalt.err (!%p1176_p6)
}
  0x48   : > { %s1180_s26 = scalar_lea.vmem %s1446_s29, 128  ;;  %s1304_s5 = smov [#allocation2]  }
  0x49   : > { %p1181_p8 = scmp.ne.s32.totalorder %s1446_s29, %s1180_s26  ;;  %s1185_s10 = sshll.u32 %s1304_s5, 4  ;;  %s1186_s10 = int_to_ptr.vmem [resolvable:$false] %s1185_s10 }
  0x4a   : > { %s1187_s2 = scalar_lea.vmem %s1186_s10, 256  ;;  %p1188_p3 = scmp.lt.s32.totalorder %s1446_s29, %s1186_s10 }
  0x4b   : > { %p1183_p10 = pnand %p1181_p8, %p1167_p0  ;;  %p1189_p7 = scmp.lt.s32.totalorder %s1187_s2, %s1180_s26 }
  0x4d   : > { %p1184_p13 = pneg %p1183_p10  ;;  %p1190_p9 = por %p1189_p7, %p1188_p3 }
  0x4f   : > { %p1191_p1 = pnand %p1190_p9, %p1184_p13 }
  0x51   : > { %1194 = shalt.err (!%p1191_p1)
}
  0x52   : > { %s1697_s12 = smov 4   ;;  %s1698_s13 = smov 64  }
  0x53   : > { %1058 = dma.hbm_to_vmem [thread:$0]  (!%p1442_p11), %s1439_s25, 128, %s1446_s29, %s1453_s20, %s1698_s13, %s1698_s13, %s1697_s12  }
  0x54   : > { %s202_s11 = scalar_lea.vmem [#allocation5], %s1434_s6  ;;  %s198_s8 = sand.u32 1, %s1299_s18  }
  0x55   : > { %s209_s7 = sshll.u32 %s202_s11, 4  ;;  %s1488_s28 = scalar_lea.sflag [#allocation6], %s198_s8  ;;  %s1486_s7 = int_to_ptr.vmem [resolvable:$true] %s209_s7 }
  0x56   : > { %s1195_s26 = scalar_lea.hbm %s1451_s14, 128  ;;  %s1200_s2 = scalar_lea.hbm %s1674_s1, 256 }
  0x57   : > { %p1196_p5 = scmp.ne.s32.totalorder %s1451_s14, %s1195_s26  ;;  %p1201_p6 = scmp.lt.u32.totalorder %s1451_s14, %s1674_s1 }
  0x58   : > { %p1202_p8 = scmp.lt.u32.totalorder %s1200_s2, %s1195_s26  ;;  %p1204_p13 = scmp.lt.u32.totalorder %s1195_s26, %s1451_s14 }
  0x59   : > { %p1198_p2 = pnand %p1196_p5, %p1167_p0 }
  0x5a   : > { %p1203_p10 = por %p1202_p8, %p1201_p6 }
  0x5b   : > { %p1199_p4 = pneg %p1198_p2 }
  0x5c   : > { %p1205_p3 = por %p1204_p13, %p1203_p10 }
  0x5e   : > { %p1206_p7 = pnand %p1205_p3, %p1199_p4 }
  0x60   : > { %1209 = shalt.err (!%p1206_p7)
}
  0x61   : > { %s1210_s6 = scalar_lea.vmem %s1486_s7, 128  ;;  %s1305_s25 = smov [#allocation5]  }
  0x62   : > { %p1211_p9 = scmp.ne.s32.totalorder %s1486_s7, %s1210_s6  ;;  %s1215_s29 = sshll.u32 %s1305_s25, 4  ;;  %s1216_s29 = int_to_ptr.vmem [resolvable:$false] %s1215_s29 }
  0x63   : > { %s1217_s0 = scalar_lea.vmem %s1216_s29, 256  ;;  %p1218_p2 = scmp.lt.s32.totalorder %s1486_s7, %s1216_s29 }
  0x64   : > { %p1213_p1 = pnand %p1211_p9, %p1167_p0  ;;  %p1219_p6 = scmp.lt.s32.totalorder %s1217_s0, %s1210_s6 }
  0x66   : > { %p1214_p5 = pneg %p1213_p1  ;;  %p1220_p8 = por %p1219_p6, %p1218_p2 }
  0x68   : > { %p1221_p10 = pnand %p1220_p8, %p1214_p5 }
  0x6a   : > { %1224 = shalt.err (!%p1221_p10)
}
  0x6b   : > { %1061 = dma.hbm_to_vmem [thread:$0]  (!%p1442_p11), %s1451_s14, 128, %s1486_s7, %s1488_s28, %s1698_s13, %s1698_s13, %s1697_s12  }
  0x6c   : > { %p1699_p0 = scmp.ne.s32.totalorder %s1689_s23, 0 }
  0x6d   : > { %s1520_s24 = sand.u32 (!%p1699_p0), 1, %s1291_s16   ;;  %p1700_p4 = scmp.ne.s32.totalorder (!%p1699_p0), %s1687_s21, 0 }
  0x6e   : > { %221 = sbr.rel (%p1699_p0) target bundleno = 809 (0x329), region = 36  ;;  %s942_s20 = sshll.u32 (!%p1699_p0), %s1520_s24, 3 }
  0x6f   : > { %s224_s11 = scalar_lea.sflag (!%p1699_p0), [#allocation3], %s1520_s24  ;;  %s227_s8 = scalar_lea.vmem (!%p1699_p0), [#allocation2], %s942_s20 }
  0x75   : > { %1270 = dma.done.wait (%p1700_p4), %s224_s11, 128  }
  0x76   : > { %1272 = vsyncadd (%p1700_p4), %s224_s11, 4294967168  ;;  %s232_s9 = sand.u32 1, %s1355_s19   ;;  %s236_s23 = scalar_lea.vmem [#allocation5], %s942_s20 }
  0x77   : > { %s233_s14 = scalar_lea.sflag [#allocation6], %s232_s9 }
  0x78   : > { %1274 = dma.done.wait (%p1700_p4), %s233_s14, 128  }
  0x79   : > { %1276 = vsyncadd (%p1700_p4), %s233_s14, 4294967168  ;;  %p1701_p11 = scmp.eq.s32.totalorder %s1355_s19, 0 }
  0x7b   : > { %1278 = dma.done.wait (%p1701_p11), [#allocation6], 128   ;;  %p1702_p13 = pmov %p1701_p11 }
  0x7c   : > { %v1306_v0 = vmov 0.0   ;;  %vm1307_vm0 = vmmov 0   ;;  %v1107_v1 = vld [vmem:[%s1676_s3] sm:$0xff]   ;;  %v274_v5 = vld [vmem:[%s236_s23] sm:$0xff]   ;;  %vm324_vm3 = vcmask 130048   ;;  %s964_s13 = sshll.u32 %s1355_s19, 4 }
  0x7d   : > { %1280 = vsyncadd (%p1702_p13), [#allocation6], 4294967168  ;;  %989 = vmatprep.subr.bf16.mxu0 %v1306_v0  ;;  %991 = vmatprep.mubr.msk.bf16.mxu0 %vm1307_vm0, %v1306_v0  ;;  %v970_v2 = vld [vmem:[%s227_s8] sm:$0xff]   ;;  %v1546_v6 = vunpack.c.l.bf16 %v274_v5  ;;  %v1548_v7 = vunpack.c.h.bf16 %v274_v5  ;;  %s268_s7 = scalar_lea.vmem [#allocation8], %s1520_s24  ;;  %s1629_s10 = scalar_lea.hbm %s1677_s4, %s964_s13 }
  0x7e   : > { %1011 = vmatprep.subr.bf16.mxu1 %v1306_v0  ;;  %1013 = vmatprep.mubr.msk.bf16.mxu1 %vm1307_vm0, %v1306_v0  ;;  %v971_v3 = vunpack.c.l.bf16 %v970_v2  ;;  %v972_v4 = vunpack.c.h.bf16 %v970_v2  ;;  %s833_s28 = sshll.u32 %s268_s7, 4  ;;  %s821_s2 = scalar_lea.sflag [#allocation4], %s1520_s24  ;;  %s1631_s28 = int_to_ptr.vmem [resolvable:$true] %s833_s28 }
  0x7f   : > { %990 = vmatpush3.bf16.msra.mxu0 %v1107_v1  ;;  %vm302_vm1 = vcmp.ne.f32.partialorder %v1546_v6, -1.0  ;;  %vm303_vm2 = vcmp.ne.f32.partialorder %v1548_v7, -1.0  ;;  %v428_v30 = vmul.f32 %v1546_v6, %v1546_v6  ;;  %v429_v31 = vmul.f32 %v1548_v7, %v1548_v7  ;;  %s1225_s6 = scalar_lea.vmem %s1631_s28, 16  ;;  %s1308_s19 = smov [#allocation8]  }
  0x80   : > { %v945_v8 = vmul.f32 -1.442695, %v971_v3  ;;  %v946_v9 = vmul.f32 -1.442695, %v972_v4  ;;  %v1553_v10 = vsel %vm302_vm1, 1.0, %v1306_v0  ;;  %v1558_v12 = vsel %vm303_vm2, 1.0, %v1306_v0  ;;  %p1226_p3 = scmp.ne.s32.totalorder %s1631_s28, %s1225_s6 }
  0x81   : > { %v325_v11 = vsel %vm324_vm3, %v1553_v10, 0.0  ;;  %v328_v13 = vsel %vm324_vm3, %v1558_v12, 0.0  ;;  %v433_v32 = vpack.c.bf16 %v429_v31, %v428_v30  ;;  %vm310_vm4 = vcmp.gt.f32.partialorder %v1553_v10, 0.0  ;;  %s1229_s25 = sshll.u32 %s1308_s19, 4  ;;  %s1230_s25 = int_to_ptr.vmem [resolvable:$false] %s1229_s25 }
  0x82   : > { %1111 = vpow2.f32 %v945_v8  ;;  %326 = vadd.xlane.f32.xlu1 %v325_v11  ;;  %vm311_vm5 = vcmp.gt.f32.partialorder %v1558_v12, 0.0  ;;  %p1227_p7 = pnand %p1226_p3, %p1428_p12  ;;  %s1231_s29 = scalar_lea.vmem %s1230_s25, 32 }
  0x83   : > { %1113 = vpow2.f32 %v946_v9  ;;  %p1232_p1 = scmp.lt.s32.totalorder %s1631_s28, %s1230_s25  ;;  %p1233_p5 = scmp.lt.s32.totalorder %s1231_s29, %s1225_s6 }
  0x84   : > { %p1228_p9 = pneg %p1227_p7 }
  0x85   : > { %p1234_p2 = por %p1233_p5, %p1232_p1 }
  0x86   : > { %329 = vadd.xlane.f32.xlu1 %v328_v13 }
  0x87   : > { %p1235_p6 = pnand %p1234_p2, %p1228_p9 }
  0x8c   : > { %v1112_v14 = vpop.eup %1111 }
  0x8d   : > { %v1114_v15 = vpop.eup %1113  ;;  %v284_v16 = vadd.f32 1.0, %v1112_v14 }
  0x8e   : > { %v285_v17 = vadd.f32 1.0, %v1114_v15 }
  0x8f   : > { %1115 = vrcp.f32 %v284_v16 }
  0x90   : > { %1117 = vrcp.f32 %v285_v17 }
  0x99   : > { %v1116_v18 = vpop.eup %1115 }
  0x9a   : > { %v1118_v19 = vpop.eup %1117  ;;  %v947_v20 = vmul.f32 -1.442695, %v1116_v18  ;;  %v426_v23 = vmul.f32 %v1116_v18, %v1116_v18  ;;  %v385_v36 = vmul.f32 %v1116_v18, %v1546_v6  ;;  %v400_v55 = vsel %vm324_vm3, %v1116_v18, 0.0 }
  0x9b   : > { %v430_v21 = vpack.c.bf16 %v1118_v19, %v1116_v18  ;;  %v948_v22 = vmul.f32 -1.442695, %v1118_v19  ;;  %v427_v24 = vmul.f32 %v1118_v19, %v1118_v19  ;;  %v386_v37 = vmul.f32 %v1118_v19, %v1548_v7 }
  0x9c   : > { %1119 = vpow2.f32 %v947_v20  ;;  %v387_v53 = vsel %vm324_vm3, %v385_v36, 0.0  ;;  %v403_v54 = vsel %vm324_vm3, %v1118_v19, 0.0  ;;  %v309_v20 = vmul.f32 0.5, %v1558_v12 }
  0x9d   : > { %992 = vmatmul.mubr.msk.bf16.vlgmr.msra.gmra.mrb[0].mxu0 %vm324_vm3, %v430_v21  ;;  %1121 = vpow2.f32 %v948_v22  ;;  %v432_v29 = vpack.c.bf16 %v427_v24, %v426_v23  ;;  %v434_v42 = vpack.c.bf16 %v386_v37, %v385_v36  ;;  %v390_v52 = vsel %vm324_vm3, %v386_v37, 0.0 }
  0x9e   : > { %995 = vmatprep.mubr.msk.bf16.mxu0 %vm1307_vm0, %v1306_v0  ;;  %391 = vadd.xlane.f32.xlu1 %v390_v52  ;;  %v308_v21 = vmul.f32 0.5, %v1553_v10 }
  0xa2   : > { %404 = vadd.xlane.f32.xlu1 %v403_v54 }
  0xa5   : > { %996 = vmatmul.mubr.msk.bf16.gmra.mrb[4].mxu0 %vm324_vm3, %v274_v5 }
  0xa6   : > { %v1120_v25 = vpop.eup %1119  ;;  %999 = vmatprep.mubr.msk.bf16.mxu0 %vm1307_vm0, %v1306_v0 }
  0xa7   : > { %v1122_v26 = vpop.eup %1121  ;;  %v296_v27 = vadd.f32 1.0, %v1120_v25 }
  0xa8   : > { %v297_v28 = vadd.f32 1.0, %v1122_v26  ;;  %v363_v26 = vsub.f32 0.0, %v309_v20 }
  0xa9   : > { %1123 = vrcp.f32 %v296_v27  ;;  %v362_v27 = vsub.f32 0.0, %v308_v21 }
  0xaa   : > { %1125 = vrcp.f32 %v297_v28 }
  0xad   : > { %1000 = vmatmul.mubr.msk.bf16.gmra.mrb[8].mxu0 %vm324_vm3, %v432_v29 }
  0xae   : > { %1003 = vmatprep.mubr.msk.bf16.mxu0 %vm1307_vm0, %v1306_v0 }
  0xb3   : > { %v1124_v33 = vpop.eup %1123 }
  0xb4   : > { %v1126_v34 = vpop.eup %1125  ;;  %v312_v35 = vsub.f32 %v1546_v6, %v1124_v33 }
  0xb5   : > { %1004 = vmatmul.mubr.msk.bf16.gmra.mrb[12].mxu0 %vm324_vm3, %v433_v32  ;;  %v313_v38 = vsub.f32 %v1548_v7, %v1126_v34 }
  0xb6   : > { %1007 = vmatprep.mubr.msk.bf16.mxu0 %vm1307_vm0, %v1306_v0  ;;  %v314_v39 = vand.u32 2147483647, %v312_v35 }
  0xb7   : > { %v315_v40 = vand.u32 2147483647, %v313_v38 }
  0xb8   : > { %v316_v41 = vsub.f32 1.0, %v314_v39 }
  0xb9   : > { %v317_v43 = vsub.f32 1.0, %v315_v40 }
  0xba   : > { %v318_v44 = vsel %vm310_vm4, %v316_v41, 1.0  ;;  %v1109_v41 = vld [vmem:[#allocation7] sm:$0xff]  }
  0xbb   : > { %v320_v45 = vsub.f32 1.0, %v318_v44  ;;  %v319_v46 = vsel %vm311_vm5, %v317_v43, 1.0  ;;  %v354_v2 = vadd.f32 1e-12, %v318_v44 }
  0xbc   : > { %v321_v47 = vsub.f32 1.0, %v319_v46  ;;  %v355_v4 = vadd.f32 1e-12, %v319_v46 }
  0xbd   : > { %1008 = vmatmul.mubr.msk.bf16.gmra.mrb[16].mxu0 %vm324_vm3, %v434_v42  ;;  %v322_v48 = vmul.f32 %v320_v45, %v320_v45  ;;  %v356_v9 = vmin.f32 %v354_v2, 1.0 }
  0xbe   : > { %v323_v49 = vmul.f32 %v321_v47, %v321_v47  ;;  %v357_v13 = vmin.f32 %v355_v4, 1.0 }
  0xbf   : > { %v338_v50 = vsel %vm324_vm3, %v322_v48, 0.0  ;;  %1127 = vlog2.f32 %v356_v9 }
  0xc0   : > { %339 = vadd.xlane.f32.xlu0 %v338_v50  ;;  %v341_v51 = vsel %vm324_vm3, %v323_v49, 0.0  ;;  %1129 = vlog2.f32 %v357_v13 }
  0xc4   : > { %342 = vadd.xlane.f32.xlu0 %v341_v51 }
  0xc8   : > { %388 = vadd.xlane.f32.xlu0 %v387_v53 }
  0xc9   : > { %v1128_v22 = vpop.eup %1127 }
  0xca   : > { %v1130_v23 = vpop.eup %1129  ;;  %v359_v30 = vmul.f32 0.6931472, %v1128_v22 }
  0xcb   : > { %v361_v28 = vmul.f32 0.6931472, %v1130_v23 }
  0xcc   : > { %401 = vadd.xlane.f32.xlu0 %v400_v55 }
 0x10f   : > { %v327_v56 = vpop.xlane.xlu1 %326 }
 0x113   : > { %v330_v58 = vpop.xlane.xlu1 %329 }
 0x114   : > { %v331_v60 = vadd.f32 %v330_v58, %v327_v56 }
 0x116   : > { %v332_v63 = vrot.slane %v331_v60, 4 }
 0x118   : > { %v333_v5 = vadd.f32 %v332_v63, %v331_v60 }
 0x11a   : > { %v334_v14 = vrot.slane %v333_v5, 2 }
 0x11c   : > { %v335_v17 = vadd.f32 %v334_v14, %v333_v5 }
 0x11e   : > { %v336_v18 = vrot.slane %v335_v17, 1 }
 0x120   : > { %v1591_v19 = vadd.f32 %v336_v18, %v335_v17 }
 0x14d   : > { %v340_v57 = vpop.xlane.xlu0 %339 }
 0x151   : > { %v343_v59 = vpop.xlane.xlu0 %342 }
 0x152   : > { %v344_v61 = vadd.f32 %v343_v59, %v340_v57 }
 0x154   : > { %v345_v62 = vrot.slane %v344_v61, 4 }
 0x156   : > { %v346_v1 = vadd.f32 %v345_v62, %v344_v61 }
 0x158   : > { %v347_v3 = vrot.slane %v346_v1, 2 }
 0x15a   : > { %v348_v8 = vadd.f32 %v347_v3, %v346_v1 }
 0x15c   : > { %v349_v11 = vrot.slane %v348_v8, 1 }
 0x15e   : > { %v350_v15 = vadd.f32 %v349_v11, %v348_v8 }
 0x160   : > { %v351_v16 = vadd.f32 1e-12, %v350_v15 }
 0x162   : > { %1131 = vrcp.f32 %v351_v16 }
 0x16c   : > { %v1132_v24 = vpop.eup %1131 }
 0x16d   : > { %v353_v25 = vmul.f32 %v1132_v24, %v1591_v19 }
 0x16f   : > { %v365_v29 = vmul.f32 %v353_v25, %v323_v49  ;;  %v364_v31 = vmul.f32 %v353_v25, %v322_v48 }
 0x170   : > { %v492_v32 = vpop.f32.mrb[0].mxu0 }
 0x171   : > { %v993_v33 = vpop.f32.mrb[1].mxu0  ;;  %v367_v34 = vmul.f32 %v365_v29, %v363_v26  ;;  %v366_v35 = vmul.f32 %v364_v31, %v362_v27 }
 0x172   : > { %v495_v36 = vpop.f32.mrb[2].mxu0 }
 0x173   : > { %v531_v37 = vpack.c.bf16 %v495_v36, %v492_v32  ;;  %v994_v38 = vpop.f32.mrb[3].mxu0  ;;  %v369_v39 = vmul.f32 %v367_v34, %v361_v28  ;;  %v368_v40 = vmul.f32 %v366_v35, %v359_v30 }
 0x175   : > { %1012 = vmatpush3.bf16.msra.mxu1 %v531_v37  ;;  %v371_v42 = vmul.f32 %v1558_v12, %v369_v39  ;;  %v370_v43 = vmul.f32 %v1553_v10, %v368_v40  ;;  %v416_v12 = vsel %vm324_vm3, %v1548_v7, 0.0  ;;  %v413_v10 = vsel %vm324_vm3, %v1546_v6, 0.0 }
 0x176   : > { %1017 = vmatprep.subr.bf16.mxu1 %v1306_v0 }
 0x177   : > { %v375_v44 = vsel %vm324_vm3, %v371_v42, 0.0  ;;  %v372_v45 = vsel %vm324_vm3, %v370_v43, 0.0 }
 0x178   : > { %v500_v46 = vpop.f32.mrb[4].mxu0  ;;  %1014 = vmatmul.mubr.msk.bf16.vlgmr.msra.gmra.mrb[0].mxu1 %vm324_vm3, %v1109_v41  ;;  %376 = vadd.xlane.f32.xlu1 %v375_v44 }
 0x179   : > { %v997_v47 = vpop.f32.mrb[5].mxu0  ;;  %1019 = vmatprep.mubr.msk.bf16.mxu1 %vm1307_vm0, %v1306_v0  ;;  %373 = vadd.xlane.f32.xlu0 %v372_v45 }
 0x17a   : > { %v503_v48 = vpop.f32.mrb[6].mxu0 }
 0x17b   : > { %v532_v49 = vpack.c.bf16 %v503_v48, %v500_v46  ;;  %v998_v50 = vpop.f32.mrb[7].mxu0 }
 0x17c   : > { %417 = vadd.xlane.f32.xlu1 %v416_v12 }
 0x17d   : > { %1018 = vmatpush3.bf16.msra.mxu1 %v532_v49  ;;  %414 = vadd.xlane.f32.xlu0 %v413_v10 }
 0x17e   : > { %1023 = vmatprep.subr.bf16.mxu1 %v1306_v0 }
 0x180   : > { %v508_v51 = vpop.f32.mrb[8].mxu0  ;;  %1020 = vmatmul.mubr.msk.bf16.vlgmr.msra.gmra.mrb[4].mxu1 %vm324_vm3, %v1109_v41 }
 0x181   : > { %v1001_v52 = vpop.f32.mrb[9].mxu0  ;;  %1025 = vmatprep.mubr.msk.bf16.mxu1 %vm1307_vm0, %v1306_v0 }
 0x182   : > { %v511_v53 = vpop.f32.mrb[10].mxu0 }
 0x183   : > { %v533_v7 = vpack.c.bf16 %v511_v53, %v508_v51  ;;  %v1002_v54 = vpop.f32.mrb[11].mxu0 }
 0x185   : > { %1024 = vmatpush3.bf16.msra.mxu1 %v533_v7 }
 0x186   : > { %1029 = vmatprep.subr.bf16.mxu1 %v1306_v0 }
 0x188   : > { %v516_v6 = vpop.f32.mrb[12].mxu0  ;;  %1026 = vmatmul.mubr.msk.bf16.vlgmr.msra.gmra.mrb[8].mxu1 %vm324_vm3, %v1109_v41 }
 0x189   : > { %v1005_v55 = vpop.f32.mrb[13].mxu0  ;;  %1031 = vmatprep.mubr.msk.bf16.mxu1 %vm1307_vm0, %v1306_v0 }
 0x18a   : > { %v519_v56 = vpop.f32.mrb[14].mxu0 }
 0x18b   : > { %v534_v57 = vpack.c.bf16 %v519_v56, %v516_v6  ;;  %v1006_v58 = vpop.f32.mrb[15].mxu0 }
 0x18d   : > { %1030 = vmatpush3.bf16.msra.mxu1 %v534_v57 }
 0x18e   : > { %1035 = vmatprep.subr.bf16.mxu1 %v1306_v0 }
 0x190   : > { %v524_v59 = vpop.f32.mrb[16].mxu0  ;;  %1032 = vmatmul.mubr.msk.bf16.vlgmr.msra.gmra.mrb[12].mxu1 %vm324_vm3, %v1109_v41 }
 0x191   : > { %v1009_v60 = vpop.f32.mrb[17].mxu0  ;;  %1037 = vmatprep.mubr.msk.bf16.mxu1 %vm1307_vm0, %v1306_v0 }
 0x192   : > { %v527_v61 = vpop.f32.mrb[18].mxu0  ;;  %v389_v60 = vpop.xlane.xlu0 %388 }
 0x193   : > { %v535_v62 = vpack.c.bf16 %v527_v61, %v524_v59  ;;  %v1010_v63 = vpop.f32.mrb[19].mxu0  ;;  %v392_v59 = vpop.xlane.xlu1 %391 }
 0x195   : > { %1036 = vmatpush3.bf16.msra.mxu1 %v535_v62 }
 0x196   : > { %v402_v62 = vpop.xlane.xlu0 %401 }
 0x197   : > { %v405_v61 = vpop.xlane.xlu1 %404 }
 0x198   : > { %1038 = vmatmul.mubr.msk.bf16.vlgmr.msra.gmra.mrb[16].mxu1 %vm324_vm3, %v1109_v41 }
 0x205   : > { %v377_v63 = vpop.xlane.xlu1 %376 }
 0x24b   : > { %v580_v1 = vpop.f32.mrb[0].mxu1 }
 0x24c   : > { %v1015_v2 = vpop.f32.mrb[1].mxu1  ;;  %v751_v8 = vmul.f32 %v580_v1, %v580_v1 }
 0x24d   : > { %v583_v3 = vpop.f32.mrb[2].mxu1 }
 0x24e   : > { %v1016_v4 = vpop.f32.mrb[3].mxu1  ;;  %v752_v15 = vmul.f32 %v583_v3, %v583_v3 }
 0x253   : > { %v621_v5 = vpop.f32.mrb[4].mxu1 }
 0x254   : > { %v753_v9 = vmul.f32 %v621_v5, %v621_v5  ;;  %v755_v11 = vmul.f32 %v621_v5, %v580_v1  ;;  %v1021_v13 = vpop.f32.mrb[5].mxu1  ;;  %v374_v1 = vpop.xlane.xlu0 %373 }
 0x255   : > { %v624_v14 = vpop.f32.mrb[6].mxu1  ;;  %v378_v2 = vadd.f32 %v377_v63, %v374_v1 }
 0x256   : > { %v773_v16 = vadd.f32 %v753_v9, %v751_v8  ;;  %v754_v17 = vmul.f32 %v624_v14, %v624_v14  ;;  %v756_v0 = vmul.f32 %v624_v14, %v583_v3  ;;  %v1022_v18 = vpop.f32.mrb[7].mxu1  ;;  %v763_v41 = vmul.f32 2.0, %v755_v11 }
 0x257   : > { %v393_v3 = vadd.f32 %v392_v59, %v389_v60  ;;  %v379_v4 = vrot.slane %v378_v2, 4 }
 0x258   : > { %v774_v20 = vadd.f32 %v754_v17, %v752_v15  ;;  %v775_v34 = vadd.f32 0.0001, %v773_v16  ;;  %v764_v46 = vmul.f32 2.0, %v756_v0  ;;  %v765_v10 = vadd.f32 0.0001, %v763_v41  ;;  %v415_v13 = vpop.xlane.xlu0 %414 }
 0x259   : > { %v394_v5 = vrot.slane %v393_v3, 4 }
 0x25a   : > { %v776_v37 = vadd.f32 0.0001, %v774_v20  ;;  %v766_v51 = vadd.f32 0.0001, %v764_v46 }
 0x25b   : > { %v662_v21 = vpop.f32.mrb[8].mxu1  ;;  %v395_v14 = vadd.f32 %v394_v5, %v393_v3 }
 0x25c   : > { %v757_v22 = vsub.f32 %v662_v21, %v751_v8  ;;  %v1027_v23 = vpop.f32.mrb[9].mxu1  ;;  %v406_v8 = vadd.f32 %v405_v61, %v402_v62 }
 0x25d   : > { %v665_v24 = vpop.f32.mrb[10].mxu1  ;;  %v396_v18 = vrot.slane %v395_v14, 2 }
 0x25e   : > { %v758_v25 = vsub.f32 %v665_v24, %v752_v15  ;;  %v1028_v26 = vpop.f32.mrb[11].mxu1  ;;  %v407_v15 = vrot.slane %v406_v8, 4 }
 0x25f   : > { %v397_v24 = vadd.f32 %v396_v18, %v395_v14 }
 0x260   : > { %v408_v20 = vadd.f32 %v407_v15, %v406_v8 }
 0x263   : > { %v703_v27 = vpop.f32.mrb[12].mxu1 }
 0x264   : > { %v759_v28 = vsub.f32 %v703_v27, %v753_v9  ;;  %v1033_v29 = vpop.f32.mrb[13].mxu1  ;;  %v380_v9 = vadd.f32 %v379_v4, %v378_v2 }
 0x265   : > { %v706_v30 = vpop.f32.mrb[14].mxu1 }
 0x266   : > { %v777_v31 = vadd.f32 %v759_v28, %v757_v22  ;;  %v760_v32 = vsub.f32 %v706_v30, %v754_v17  ;;  %v1034_v33 = vpop.f32.mrb[15].mxu1  ;;  %v381_v16 = vrot.slane %v380_v9, 2  ;;  %v398_v28 = vrot.slane %v397_v24, 1 }
 0x268   : > { %v779_v35 = vadd.f32 0.0009, %v777_v31  ;;  %v778_v36 = vadd.f32 %v760_v32, %v758_v25  ;;  %v382_v21 = vadd.f32 %v381_v16, %v380_v9  ;;  %v409_v25 = vrot.slane %v408_v20, 2 }
 0x269   : > { %v399_v33 = vadd.f32 %v398_v28, %v397_v24 }
 0x26a   : > { %v781_v38 = vmul.f32 %v779_v35, %v775_v34  ;;  %v780_v39 = vadd.f32 0.0009, %v778_v36  ;;  %v383_v26 = vrot.slane %v382_v21, 1  ;;  %v410_v29 = vadd.f32 %v409_v25, %v408_v20 }
 0x26b   : > { %v744_v40 = vpop.f32.mrb[16].mxu1 }
 0x26c   : > { %1133 = vrcp.f32 %v781_v38  ;;  %v782_v42 = vmul.f32 %v780_v39, %v776_v37  ;;  %v761_v43 = vsub.f32 %v744_v40, %v755_v11  ;;  %v1039_v44 = vpop.f32.mrb[17].mxu1  ;;  %v418_v11 = vpop.xlane.xlu1 %417  ;;  %v384_v30 = vadd.f32 %v383_v26, %v382_v21 }
 0x26d   : > { %v747_v45 = vpop.f32.mrb[18].mxu1  ;;  %v419_v17 = vadd.f32 %v418_v11, %v415_v13  ;;  %v411_v34 = vrot.slane %v410_v29, 1 }
 0x26e   : > { %1135 = vrcp.f32 %v782_v42  ;;  %v767_v47 = vmul.f32 2.0, %v761_v43  ;;  %v762_v12 = vsub.f32 %v747_v45, %v756_v0  ;;  %v1040_v48 = vpop.f32.mrb[19].mxu1  ;;  %v800_v0 = vlaneseq }
 0x26f   : > { %v420_v22 = vrot.slane %v419_v17, 4  ;;  %v412_v42 = vadd.f32 %v411_v34, %v410_v29 }
 0x270   : > { %v769_v49 = vadd.f32 0.0009, %v767_v47  ;;  %v768_v50 = vmul.f32 2.0, %v762_v12  ;;  %v801_v23 = vand.u32 127, %v800_v0 }
 0x271   : > { %v421_v27 = vadd.f32 %v420_v22, %v419_v17 }
 0x272   : > { %v771_v52 = vmul.f32 %v769_v49, %v765_v10  ;;  %v770_v53 = vadd.f32 0.0009, %v768_v50  ;;  %vm804_vm6 = vcmp.eq.s32.totalorder %v801_v23, 1  ;;  %vm802_vm7 = vcmp.eq.s32.totalorder %v801_v23, 0 }
 0x273   : > { %v422_v31 = vrot.slane %v421_v27, 2  ;;  %v805_v32 = vsel %vm804_vm6, %v1591_v19, 0.0  ;;  %v803_v35 = vsel %vm802_vm7, %v384_v30, 0.0  ;;  %vm807_vm8 = vcmp.eq.s32.totalorder %v801_v23, 2 }
 0x274   : > { %v772_v7 = vmul.f32 %v770_v53, %v766_v51  ;;  %v806_v40 = vadd.f32 %v805_v32, %v803_v35  ;;  %v808_v41 = vsel %vm807_vm8, %v399_v33, 0.0  ;;  %vm810_vm9 = vcmp.eq.s32.totalorder %v801_v23, 3 }
 0x275   : > { %v423_v36 = vadd.f32 %v422_v31, %v421_v27  ;;  %v811_v47 = vsel %vm810_vm9, %v412_v42, 0.0  ;;  %vm813_vm10 = vcmp.eq.s32.totalorder %v801_v23, 4  ;;  %vm816_vm11 = vcmp.eq.s32.totalorder %v801_v23, 5 }
 0x276   : > { %v1134_v54 = vpop.eup %1133  ;;  %v809_v46 = vadd.f32 %v808_v41, %v806_v40 }
 0x277   : > { %v785_v6 = vmul.f32 %v1134_v54, %v771_v52  ;;  %v424_v43 = vrot.slane %v423_v36, 1 }
 0x278   : > { %v1136_v55 = vpop.eup %1135  ;;  %v812_v10 = vadd.f32 %v811_v47, %v809_v46 }
 0x279   : > { %v787_v56 = vsel %vm324_vm3, %v785_v6, 0.0  ;;  %v786_v57 = vmul.f32 %v1136_v55, %v772_v7  ;;  %v425_v19 = vadd.f32 %v424_v43, %v423_v36 }
 0x27a   : > { %788 = vadd.xlane.f32.xlu0 %v787_v56 }
 0x27b   : > { %v790_v58 = vsel %vm324_vm3, %v786_v57, 0.0  ;;  %v814_v49 = vsel %vm813_vm10, %v425_v19, 0.0 }
 0x27c   : > { %791 = vadd.xlane.f32.xlu1 %v790_v58  ;;  %v815_v52 = vadd.f32 %v814_v49, %v812_v10 }
 0x307   : > { %v789_v37 = vpop.xlane.xlu0 %788 }
 0x309   : > { %v792_v38 = vpop.xlane.xlu1 %791 }
 0x30a   : > { %v793_v39 = vadd.f32 %v792_v38, %v789_v37 }
 0x30c   : > { %v794_v44 = vrot.slane %v793_v39, 4 }
 0x30e   : > { %v795_v45 = vadd.f32 %v794_v44, %v793_v39 }
 0x310   : > { %v796_v12 = vrot.slane %v795_v45, 2 }
 0x312   : > { %v797_v48 = vadd.f32 %v796_v12, %v795_v45 }
 0x314   : > { %v798_v50 = vrot.slane %v797_v48, 1 }
 0x316   : > { %v799_v51 = vadd.f32 %v798_v50, %v797_v48 }
 0x318   : > { %v817_v53 = vsel %vm816_vm11, %v799_v51, 0.0 }
 0x319   : > { %v818_v7 = vadd.f32 %v817_v53, %v815_v52 }
 0x31b   : > { %819 = vst [vmem:[%s268_s7] sm:$0x1] %v818_v7 }
 0x31c   : > { %1238 = shalt.err (!%p1235_p6)
}
 0x31d   : > { %s1239_s0 = scalar_lea.hbm %s1629_s10, 16  ;;  %s1243_s11 = scalar_lea.hbm %s1677_s4, 32 }
 0x31e   : > { %p1240_p8 = scmp.ne.s32.totalorder %s1629_s10, %s1239_s0  ;;  %p1244_p4 = scmp.lt.u32.totalorder %s1629_s10, %s1677_s4 }
 0x31f   : > { %p1245_p11 = scmp.lt.u32.totalorder %s1243_s11, %s1239_s0  ;;  %p1247_p3 = scmp.lt.u32.totalorder %s1239_s0, %s1629_s10 }
 0x320   : > { %p1241_p10 = pnand %p1240_p8, %p1428_p12 }
 0x321   : > { %p1246_p13 = por %p1245_p11, %p1244_p4 }
 0x322   : > { %p1242_p0 = pneg %p1241_p10 }
 0x323   : > { %p1248_p7 = por %p1247_p3, %p1246_p13 }
 0x325   : > { %p1249_p9 = pnand %p1248_p7, %p1242_p0 }
 0x327   : > { %1252 = shalt.err (!%p1249_p9)
}
 0x328   : > { %1049 = dma.vmem_to_hbm [thread:$0]  (%p1428_p12), %s1631_s28, 16, %s1629_s10, %s821_s2  }
 0x329 PF: > { %s845_s14 = sand.u32 1, %s1287_s15   ;;  %p1703_p1 = scmp.ne.s32.totalorder %s1688_s22, 0 }
 0x32a   : > { %p1704_p5 = scmp.ge.s32.totalorder %s1299_s18, 2  ;;  %s846_s23 = scalar_lea.sflag [#allocation4], %s845_s14 }
 0x32c   : > { %p1063_p2 = pnand %p1704_p5, %p1703_p1 }
 0x32e   : > { %1282 = dma.done.wait (!%p1063_p2), %s846_s23, 16  }
 0x32f   : > { %1284 = vsyncadd (!%p1063_p2), %s846_s23, 4294967280  ;;  %s1705_s21 = sld [smem:[#allocation13_spill]]  ;;  %p20_p6 = scmp.ge.s32.totalorder %s1390_s27, 4  }
 0x330   : > { %s1706_s15 = smov %s1291_s16  ;;  %s1707_s16 = smov %s1295_s17 }
 0x331   : > { %s1709_s18 = smov %s1390_s27  ;;  %22 = sbr.rel (!%p20_p6) target bundleno = 10 (0xa), region = 98 }
 0x335   : > { %s1708_s17 = smov %s1705_s21 }
 0x338   :  { %850 = vsyncpa [#allocation3], 1 }
 0x339   :  { %852 = vsyncpa [#allocation3 + $0x1], 1 }
 0x33a   :  { %853 = vsyncpa [#allocation6], 1 }
 0x33b   :  { %855 = vsyncpa [#allocation6 + $0x1], 1 }
 0x33c   :  { %856 = vsyncpa [#allocation4], 1 }
 0x33d   :  { %858 = vsyncpa [#allocation4 + $0x1], 1 }

</bundles_post_ra>
